<compile_context>
chip_gen: v7x
topology: tpu7x:2x2x1
jax: 0.10.0
libtpu: 0.0.40
codegen_flags: <defaults>
</compile_context>

<pallas_src>
import jax
import jax.numpy as jnp
from jax.experimental import pallas as pl
from jax.experimental.pallas import tpu as pltpu


def _round_up(v, m):
    return ((v + m - 1) // m) * m


def _pick_tile(total, align, cap, min_tiles=1):
    """Largest divisor of `total` that is a multiple of `align`, <= cap, leaving >= min_tiles tiles."""
    best = align
    t = align
    limit = min(cap, total)
    while t <= limit:
        if total % t == 0 and total // t >= min_tiles:
            best = t
        t += align
    return best


def temporal_gnn_kernel(a_ref, xw_ref,            # bf16 tiles: A_norm, pre-projected X @ W_gcn
                        bg_ref,                   # GCN bias (f32, (1, H_pad))
                        wgru_ref, bgru_ref,       # fused GRU gate weight (bf16) / bias (f32)
                        bhn_ref,                  # hidden-side bias of the "n" gate (f32)
                        wl_ref,                   # final linear as a (1, H_pad) f32 row
                        out_ref,                  # (TM, 128) lane-dense bf16 output
                        acc_ref):                 # (TM, H_pad) f32 accumulator scratch
    k = pl.program_id(1)

    @pl.when(k == 0)
    def _():
        acc_ref[...] = jnp.zeros_like(acc_ref)

    # ---- GCN aggregation with pre-projected features: acc += A_tile @ (X W_gcn)_tile ----
    acc_ref[...] += jnp.dot(a_ref[...], xw_ref[...],
                            preferred_element_type=jnp.float32)

    @pl.when(k == pl.num_programs(1) - 1)
    def _():
        hp = bhn_ref.shape[1]                      # padded hidden width (static)

        # ---- GCNConv epilogue: + bias, ReLU --------------------------------------
        h = jnp.maximum(acc_ref[...] + bg_ref[...], 0.0)
        # Dropout: inference-mode identity.
        # TODO(synk): training-mode stochastic dropout (pltpu.prng_seed/prng_random_bits) not applied.

        # ---- GRU, single step, h_0 = 0: one fused gate matmul ---------------------
        #   gates = x @ [W_ir | W_iz | W_in] + [b_ir+b_hr | b_iz+b_hz | b_in]
        gates = jnp.dot(h.astype(jnp.bfloat16), wgru_ref[...],
                        preferred_element_type=jnp.float32) + bgru_ref[...]
        r = jax.nn.sigmoid(gates[:, 0 * hp:1 * hp])
        z = jax.nn.sigmoid(gates[:, 1 * hp:2 * hp])
        n = jnp.tanh(gates[:, 2 * hp:3 * hp] + r * bhn_ref[...])
        h_gru = (1.0 - z) * n                      # since h_0 = 0

        # ---- Linear(H, 1): VPU multiply + lane reduction (no 1-column MXU pass) ---
        y = jnp.sum(h_gru * wl_ref[...], axis=-1, keepdims=True)
        # lane-dense bf16 store; wrapper slices column 0 and adds b_lin
        out_ref[...] = jnp.broadcast_to(y, out_ref.shape).astype(out_ref.dtype)


def temporal_gnn_forward(x, edge_index, params):
    """x: (N, F) float32, edge_index: (2, E) int32 (row 0 = src, row 1 = dst)."""
    N, F = x.shape
    H = params["w_gcn"].shape[1]

    # --- glue: dense symmetric-normalized adjacency  D^-1/2 (A + I) D^-1/2 ----------
    # add-aggregation over (possibly duplicated) edges; self-loop added only where missing.
    # TODO(synk): for large sparse graphs keep A in CSR + scalar-prefetch tile skipping
    #             (PrefetchScalarGridSpec with a nonzero-tile list) instead of dense O(N^2) A.
    src, dst = edge_index[0], edge_index[1]
    a_hat = jnp.zeros((N, N), jnp.float32).at[dst, src].add(1.0)
    diag = jnp.diagonal(a_hat)
    a_hat = a_hat + jnp.diag(jnp.where(diag > 0.0, 0.0, 1.0))
    deg = jnp.sum(a_hat, axis=1)
    dinv = jnp.where(deg > 0.0, jax.lax.rsqrt(deg), 0.0)
    a_norm = a_hat * dinv[:, None] * dinv[None, :]

    # --- TPU-friendly padding / tiling ----------------------------------------------
    H_pad = _round_up(H, 128)
    N_pad = _round_up(N, 128)                 # pad N only to the lane quantum (no O(N^2) TM-rounding)
    # TK = streamed reduction axis (lane dim of the A tile): big tiles, capped for v7x VMEM.
    TK = _pick_tile(N_pad, 128, 2048)
    # TM = row-tile (sublane dim): only needs to be a multiple of 8; prefer >=2 tiles (megacore).
    TM = _pick_tile(N_pad, 8, 512, min_tiles=2 if N_pad >= 256 else 1)
    OUT_LANES = 128

    # Pre-project X @ W_gcn in the wrapper (tiny matmul) -> lane-dense in-kernel accumulation.
    xw = x.astype(jnp.float32) @ params["w_gcn"].astype(jnp.float32)

    a_p = jnp.zeros((N_pad, N_pad), jnp.bfloat16).at[:N, :N].set(
        a_norm.astype(jnp.bfloat16))
    xw_p = jnp.zeros((N_pad, H_pad), jnp.bfloat16).at[:N, :H].set(
        xw.astype(jnp.bfloat16))

    bg = jnp.zeros((1, H_pad), jnp.float32).at[:, :H].set(params["b_gcn"])

    # fused GRU gate weights (H_pad, 3*H_pad) = [W_ir | W_iz | W_in]
    wgru = jnp.zeros((H_pad, 3 * H_pad), jnp.bfloat16)
    wgru = wgru.at[:H, 0 * H_pad:0 * H_pad + H].set(params["w_ir"].astype(jnp.bfloat16))
    wgru = wgru.at[:H, 1 * H_pad:1 * H_pad + H].set(params["w_iz"].astype(jnp.bfloat16))
    wgru = wgru.at[:H, 2 * H_pad:2 * H_pad + H].set(params["w_in"].astype(jnp.bfloat16))
    # fused biases (1, 3*H_pad) = [b_ir + b_hr | b_iz + b_hz | b_in]
    bgru = jnp.zeros((1, 3 * H_pad), jnp.float32)
    bgru = bgru.at[:, 0 * H_pad:0 * H_pad + H].set(params["b_ir"] + params["b_hr"])
    bgru = bgru.at[:, 1 * H_pad:1 * H_pad + H].set(params["b_iz"] + params["b_hz"])
    bgru = bgru.at[:, 2 * H_pad:2 * H_pad + H].set(params["b_in"])
    bhn = jnp.zeros((1, H_pad), jnp.float32).at[:, :H].set(params["b_hn"])

    wl = jnp.zeros((1, H_pad), jnp.float32).at[:, :H].set(params["w_lin"].reshape(1, H))

    grid = (N_pad // TM, N_pad // TK)

    out = pl.pallas_call(
        temporal_gnn_kernel,
        out_shape=jax.ShapeDtypeStruct((N_pad, OUT_LANES), jnp.bfloat16),
        grid_spec=pltpu.PrefetchScalarGridSpec(
            num_scalar_prefetch=0,
            grid=grid,
            in_specs=[
                pl.BlockSpec((TM, TK), lambda i, k: (i, k)),           # A tile
                pl.BlockSpec((TK, H_pad), lambda i, k: (k, 0)),        # (X @ W_gcn) tile
                pl.BlockSpec((1, H_pad), lambda i, k: (0, 0)),         # b_gcn
                pl.BlockSpec((H_pad, 3 * H_pad), lambda i, k: (0, 0)), # fused W_gru
                pl.BlockSpec((1, 3 * H_pad), lambda i, k: (0, 0)),     # fused b_gru
                pl.BlockSpec((1, H_pad), lambda i, k: (0, 0)),         # b_hn
                pl.BlockSpec((1, H_pad), lambda i, k: (0, 0)),         # w_lin row
            ],
            out_specs=pl.BlockSpec((TM, OUT_LANES), lambda i, k: (i, 0)),
            scratch_shapes=[pltpu.VMEM((TM, H_pad), jnp.float32)],
        ),
        compiler_params=pltpu.CompilerParams(
            dimension_semantics=("parallel", "arbitrary"),
            vmem_limit_bytes=48 * 1024 * 1024,
        ),
    )(a_p, xw_p, bg, wgru, bgru, bhn, wl)

    # b_lin added here instead of as a (1,1) VMEM block inside the kernel.
    return out[:N, :1].astype(jnp.float32) + params["b_lin"].reshape(1, 1)


def init_params(key, num_features, num_hidden):
    ks = jax.random.split(key, 12)
    s = 0.1
    F, H = num_features, num_hidden
    return {
        # GCNConv weight (F, H) + bias (1, H)
        "w_gcn": s * jax.random.normal(ks[0], (F, H), jnp.float32),
        "b_gcn": s * jax.random.normal(ks[1], (1, H), jnp.float32),
        # GRU input->hidden weights, stored as (H_in, H_out) so kernel does x @ W
        "w_ir": s * jax.random.normal(ks[2], (H, H), jnp.float32),
        "w_iz": s * jax.random.normal(ks[3], (H, H), jnp.float32),
        "w_in": s * jax.random.normal(ks[4], (H, H), jnp.float32),
        # GRU biases (input-side and hidden-side), broadcast over nodes
        "b_ir": s * jax.random.normal(ks[5], (1, H), jnp.float32),
        "b_iz": s * jax.random.normal(ks[6], (1, H), jnp.float32),
        "b_in": s * jax.random.normal(ks[7], (1, H), jnp.float32),
        "b_hr": s * jax.random.normal(ks[8], (1, H), jnp.float32),
        "b_hz": s * jax.random.normal(ks[9], (1, H), jnp.float32),
        "b_hn": s * jax.random.normal(ks[10], (1, H), jnp.float32),
        # Final Linear(H, 1)
        "w_lin": s * jax.random.normal(ks[11], (H, 1), jnp.float32),
        "b_lin": jnp.zeros((1, 1), jnp.float32),
    }


if __name__ == "__main__":
    num_nodes = 16
    num_features = 8
    num_hidden = 32

    key = jax.random.PRNGKey(0)
    k_x, k_e, k_p = jax.random.split(key, 3)

    # Node features (data.x) and a small random edge_index (data.edge_index).
    x = jax.random.normal(k_x, (num_nodes, num_features), jnp.float32)
    num_edges = 40
    edge_index = jax.random.randint(k_e, (2, num_edges), 0, num_nodes, jnp.int32)

    params = init_params(k_p, num_features, num_hidden)

    out = temporal_gnn_forward(x, edge_index, params)
    out = jax.block_until_ready(out)
    assert out.shape == (num_nodes, 1)
    print("KERNEL_OK")
</pallas_src>

<mosaic_0001>
module attributes {stable_mosaic.version = 11 : i64} {
  func.func @temporal_gnn_kernel(%arg0: i32, %arg1: i32, %arg2: memref<128x128xbf16, #tpu.memory_space<vmem>>, %arg3: memref<128x128xbf16, #tpu.memory_space<vmem>>, %arg4: memref<1x128xf32, #tpu.memory_space<vmem>>, %arg5: memref<128x384xbf16, #tpu.memory_space<vmem>>, %arg6: memref<1x384xf32, #tpu.memory_space<vmem>>, %arg7: memref<1x128xf32, #tpu.memory_space<vmem>>, %arg8: memref<1x128xf32, #tpu.memory_space<vmem>>, %arg9: memref<128x128xbf16, #tpu.memory_space<vmem>>, %arg10: memref<128x128xf32, #tpu.memory_space<vmem>>) attributes {dimension_semantics = [#tpu.dimension_semantics<parallel>, #tpu.dimension_semantics<arbitrary>], iteration_bounds = array<i64: 1, 1>, scalar_prefetch = 0 : i64, scratch_operands = 1 : i64, tpu.core_type = #tpu.core_type<tc>, window_params = [{transform_indices = @transform_0, window_bounds = array<i64: 128, 128>}, {transform_indices = @transform_1, window_bounds = array<i64: 128, 128>}, {pipeline_mode = #tpu.pipeline_mode<synchronous>, transform_indices = @transform_2, window_bounds = array<i64: 1, 128>}, {pipeline_mode = #tpu.pipeline_mode<synchronous>, transform_indices = @transform_3, window_bounds = array<i64: 128, 384>}, {pipeline_mode = #tpu.pipeline_mode<synchronous>, transform_indices = @transform_4, window_bounds = array<i64: 1, 384>}, {pipeline_mode = #tpu.pipeline_mode<synchronous>, transform_indices = @transform_5, window_bounds = array<i64: 1, 128>}, {pipeline_mode = #tpu.pipeline_mode<synchronous>, transform_indices = @transform_6, window_bounds = array<i64: 1, 128>}, {transform_indices = @transform_7, window_bounds = array<i64: 128, 128>}]} {
    %c0_i32 = arith.constant 0 : i32
    %0 = arith.cmpi eq, %arg1, %c0_i32 : i32
    %1 = arith.extui %0 : i1 to i32
    %c0_i32_0 = arith.constant 0 : i32
    %2 = arith.cmpi ne, %1, %c0_i32_0 : i32
    scf.if %2 {
      %cst_10 = arith.constant 0.000000e+00 : f32
      %12 = vector.broadcast %cst_10 : f32 to vector<128x128xf32>
      %c0_11 = arith.constant 0 : index
      %c0_12 = arith.constant 0 : index
      %13 = vector.load %arg10[%c0_11, %c0_12] : memref<128x128xf32, #tpu.memory_space<vmem>>, vector<128x128xf32>
      tpu.vector_store %arg10[%c0_11, %c0_12], %12 {strides = array<i32>} : memref<128x128xf32, #tpu.memory_space<vmem>>, vector<128x128xf32>,
    } else {
    }
    %c0 = arith.constant 0 : index
    %c0_1 = arith.constant 0 : index
    %3 = vector.load %arg10[%c0, %c0_1] : memref<128x128xf32, #tpu.memory_space<vmem>>, vector<128x128xf32>
    %c0_2 = arith.constant 0 : index
    %c0_3 = arith.constant 0 : index
    %4 = vector.load %arg2[%c0_2, %c0_3] : memref<128x128xbf16, #tpu.memory_space<vmem>>, vector<128x128xbf16>
    %c0_4 = arith.constant 0 : index
    %c0_5 = arith.constant 0 : index
    %5 = vector.load %arg3[%c0_4, %c0_5] : memref<128x128xbf16, #tpu.memory_space<vmem>>, vector<128x128xbf16>
    %cst = arith.constant dense<0.000000e+00> : vector<128x128xf32>
    %6 = tpu.matmul %4, %5, %cst {dimension_numbers = #tpu.dot_dimension_numbers<[1], [0], [0], [1], [0, 0, 1, 1], [], []>} : vector<128x128xbf16>, vector<128x128xbf16>, vector<128x128xf32> -> vector<128x128xf32>
    %7 = arith.addf %3, %6 : vector<128x128xf32>
    %c0_6 = arith.constant 0 : index
    %c0_7 = arith.constant 0 : index
    %8 = vector.load %arg10[%c0_6, %c0_7] : memref<128x128xf32, #tpu.memory_space<vmem>>, vector<128x128xf32>
    tpu.vector_store %arg10[%c0_6, %c0_7], %7 {strides = array<i32>} : memref<128x128xf32, #tpu.memory_space<vmem>>, vector<128x128xf32>,
    %c0_i32_8 = arith.constant 0 : i32
    %9 = arith.cmpi eq, %arg1, %c0_i32_8 : i32
    %10 = arith.extui %9 : i1 to i32
    %c0_i32_9 = arith.constant 0 : i32
    %11 = arith.cmpi ne, %10, %c0_i32_9 : i32
    scf.if %11 {
      %c0_10 = arith.constant 0 : index
      %c0_11 = arith.constant 0 : index
      %12 = vector.load %arg10[%c0_10, %c0_11] : memref<128x128xf32, #tpu.memory_space<vmem>>, vector<128x128xf32>
      %c0_12 = arith.constant 0 : index
      %c0_13 = arith.constant 0 : index
      %13 = vector.load %arg4[%c0_12, %c0_13] : memref<1x128xf32, #tpu.memory_space<vmem>>, vector<1x128xf32>
      %14 = vector.broadcast %13 : vector<1x128xf32> to vector<128x128xf32>
      %15 = arith.addf %12, %14 : vector<128x128xf32>
      %cst_14 = arith.constant 0.000000e+00 : f32
      %16 = vector.broadcast %cst_14 : f32 to vector<128x128xf32>
      %17 = arith.maximumf %15, %16 : vector<128x128xf32>
      %18 = arith.truncf %17 : vector<128x128xf32> to vector<128x128xbf16>
      %c0_15 = arith.constant 0 : index
      %c0_16 = arith.constant 0 : index
      %19 = vector.load %arg5[%c0_15, %c0_16] : memref<128x384xbf16, #tpu.memory_space<vmem>>, vector<128x384xbf16>
      %cst_17 = arith.constant dense<0.000000e+00> : vector<128x384xf32>
      %20 = tpu.matmul %18, %19, %cst_17 {dimension_numbers = #tpu.dot_dimension_numbers<[1], [0], [0], [1], [0, 0, 1, 1], [], []>} : vector<128x128xbf16>, vector<128x384xbf16>, vector<128x384xf32> -> vector<128x384xf32>
      %c0_18 = arith.constant 0 : index
      %c0_19 = arith.constant 0 : index
      %21 = vector.load %arg6[%c0_18, %c0_19] : memref<1x384xf32, #tpu.memory_space<vmem>>, vector<1x384xf32>
      %22 = vector.broadcast %21 : vector<1x384xf32> to vector<128x384xf32>
      %23 = arith.addf %20, %22 : vector<128x384xf32>
      %24 = vector.extract_strided_slice %23 {offsets = [0, 0], sizes = [128, 128], strides = [1, 1]} : vector<128x384xf32> to vector<128x128xf32>
      %25 = arith.negf %24 : vector<128x128xf32>
      %26 = math.exp %25 : vector<128x128xf32>
      %cst_20 = arith.constant 1.000000e+00 : f32
      %27 = vector.broadcast %cst_20 : f32 to vector<128x128xf32>
      %28 = arith.addf %27, %26 : vector<128x128xf32>
      %29 = arith.divf %27, %28 : vector<128x128xf32>
      %30 = vector.extract_strided_slice %23 {offsets = [0, 128], sizes = [128, 128], strides = [1, 1]} : vector<128x384xf32> to vector<128x128xf32>
      %31 = arith.negf %30 : vector<128x128xf32>
      %32 = math.exp %31 : vector<128x128xf32>
      %cst_21 = arith.constant 1.000000e+00 : f32
      %33 = vector.broadcast %cst_21 : f32 to vector<128x128xf32>
      %34 = arith.addf %33, %32 : vector<128x128xf32>
      %35 = arith.divf %33, %34 : vector<128x128xf32>
      %36 = vector.extract_strided_slice %23 {offsets = [0, 256], sizes = [128, 128], strides = [1, 1]} : vector<128x384xf32> to vector<128x128xf32>
      %c0_22 = arith.constant 0 : index
      %c0_23 = arith.constant 0 : index
      %37 = vector.load %arg7[%c0_22, %c0_23] : memref<1x128xf32, #tpu.memory_space<vmem>>, vector<1x128xf32>
      %38 = vector.broadcast %37 : vector<1x128xf32> to vector<128x128xf32>
      %39 = arith.mulf %29, %38 : vector<128x128xf32>
      %40 = arith.addf %36, %39 : vector<128x128xf32>
      %41 = math.tanh %40 : vector<128x128xf32>
      %cst_24 = arith.constant 1.000000e+00 : f32
      %42 = vector.broadcast %cst_24 : f32 to vector<128x128xf32>
      %43 = arith.subf %42, %35 : vector<128x128xf32>
      %44 = arith.mulf %43, %41 : vector<128x128xf32>
      %c0_25 = arith.constant 0 : index
      %c0_26 = arith.constant 0 : index
      %45 = vector.load %arg8[%c0_25, %c0_26] : memref<1x128xf32, #tpu.memory_space<vmem>>, vector<1x128xf32>
      %46 = vector.broadcast %45 : vector<1x128xf32> to vector<128x128xf32>
      %47 = arith.mulf %44, %46 : vector<128x128xf32>
      %cst_27 = arith.constant dense<0.000000e+00> : vector<128xf32>
      %48 = vector.multi_reduction <add>, %47, %cst_27 [1] : vector<128x128xf32> to vector<128xf32>
      %49 = vector.shape_cast %48 : vector<128xf32> to vector<128x1xf32>
      %50 = vector.shape_cast %49 : vector<128x1xf32> to vector<128x1xf32>
      %51 = vector.broadcast %50 : vector<128x1xf32> to vector<128x128xf32>
      %52 = arith.truncf %51 : vector<128x128xf32> to vector<128x128xbf16>
      %c0_28 = arith.constant 0 : index
      %c0_29 = arith.constant 0 : index
      %53 = vector.load %arg9[%c0_28, %c0_29] : memref<128x128xbf16, #tpu.memory_space<vmem>>, vector<128x128xbf16>
      tpu.vector_store %arg9[%c0_28, %c0_29], %52 {strides = array<i32>} : memref<128x128xbf16, #tpu.memory_space<vmem>>, vector<128x128xbf16>,
    } else {
    }
    return
  }
  func.func @transform_0(%arg0: i32, %arg1: i32) -> (i32, i32) {
    %c0_i32 = arith.constant 0 : i32
    return %arg0, %arg1 : i32, i32
  }
  func.func @transform_1(%arg0: i32, %arg1: i32) -> (i32, i32) {
    %c0_i32 = arith.constant 0 : i32
    %c0_i32_0 = arith.constant 0 : i32
    return %arg1, %c0_i32 : i32, i32
  }
  func.func @transform_2(%arg0: i32, %arg1: i32) -> (i32, i32) {
    %c0_i32 = arith.constant 0 : i32
    %c0_i32_0 = arith.constant 0 : i32
    %c0_i32_1 = arith.constant 0 : i32
    return %c0_i32, %c0_i32_0 : i32, i32
  }
  func.func @transform_3(%arg0: i32, %arg1: i32) -> (i32, i32) {
    %c0_i32 = arith.constant 0 : i32
    %c0_i32_0 = arith.constant 0 : i32
    %c0_i32_1 = arith.constant 0 : i32
    return %c0_i32, %c0_i32_0 : i32, i32
  }
  func.func @transform_4(%arg0: i32, %arg1: i32) -> (i32, i32) {
    %c0_i32 = arith.constant 0 : i32
    %c0_i32_0 = arith.constant 0 : i32
    %c0_i32_1 = arith.constant 0 : i32
    return %c0_i32, %c0_i32_0 : i32, i32
  }
  func.func @transform_5(%arg0: i32, %arg1: i32) -> (i32, i32) {
    %c0_i32 = arith.constant 0 : i32
    %c0_i32_0 = arith.constant 0 : i32
    %c0_i32_1 = arith.constant 0 : i32
    return %c0_i32, %c0_i32_0 : i32, i32
  }
  func.func @transform_6(%arg0: i32, %arg1: i32) -> (i32, i32) {
    %c0_i32 = arith.constant 0 : i32
    %c0_i32_0 = arith.constant 0 : i32
    %c0_i32_1 = arith.constant 0 : i32
    return %c0_i32, %c0_i32_0 : i32, i32
  }
  func.func @transform_7(%arg0: i32, %arg1: i32) -> (i32, i32) {
    %c0_i32 = arith.constant 0 : i32
    %c0_i32_0 = arith.constant 0 : i32
    return %arg0, %c0_i32 : i32, i32
  }
}

</mosaic_0001>

<bundles_post_ra>
// kernel: tpu_custom_call.1
= control target key start
LH: loop header
LB: loop body
LE: loop exit
PB: predicated region body
PF: predicated region fallthrough
CT: control target
= control target key end

     0   :  { %12 = vsyncpa [#allocation4], 0  ;;  %s2162_s0 = inlined_call_operand.hbm [shape: bf16[128,128], index: 0, kind: input, shape index: {}]   ;;  %s2163_s1 = inlined_call_operand.hbm [shape: bf16[128,128], index: 1, kind: input, shape index: {}]   ;;  %s2164_s2 = inlined_call_operand.vmem [shape: f32[1,128], index: 2, kind: input, shape index: {}]   ;;  %s2165_s3 = inlined_call_operand.hbm [shape: bf16[128,384], index: 3, kind: input, shape index: {}]   ;;  %s2166_s4 = inlined_call_operand.vmem [shape: f32[1,384], index: 4, kind: input, shape index: {}]   ;;  %s2167_s5 = inlined_call_operand.vmem [shape: f32[1,128], index: 5, kind: input, shape index: {}]   ;;  %s2168_s6 = inlined_call_operand.vmem [shape: f32[1,128], index: 6, kind: input, shape index: {}]   ;;  %s2169_s7 = inlined_call_operand.hbm [shape: bf16[128,128], index: 7, kind: output, shape index: {}]  }
   0x1   :  { %13 = vsyncpa [#allocation7], 0 }
   0x2   :  { %14 = vsyncpa [#allocation5], 0  ;;  %s1811_s24 = smov [#allocation6]   ;;  %s1812_s26 = smov [#allocation3]  }
   0x3   :  { %s32_s25 = sshll.u32 %s1811_s24, 4  ;;  %s20_s27 = sshll.u32 %s1812_s26, 4  ;;  %s33_s25 = int_to_ptr.vmem [resolvable:$true] %s32_s25  ;;  %s1862_s27 = int_to_ptr.vmem [resolvable:$true] %s20_s27 }
   0x4   :  { %s1717_s30 = scalar_lea.hbm %s2163_s1, 1024 }
   0x5   :  { %p1718_p0 = scmp.ne.s32.totalorder %s2163_s1, %s1717_s30  ;;  %p1721_p1 = scmp.lt.u32.totalorder %s1717_s30, %s2163_s1 }
   0x7   :  { %p1723_p2 = pnand %p1721_p1, %p1718_p0 }
   0x9   :  { %1726 = shalt.err (!%p1723_p2)
}
   0xa   :  { %s1727_s12 = scalar_lea.vmem %s33_s25, 1024  ;;  %p1732_p4 = scmp.lt.s32.totalorder %s33_s25, %s33_s25 }
   0xb   :  { %p1728_p3 = scmp.ne.s32.totalorder %s33_s25, %s1727_s12  ;;  %p1733_p5 = scmp.lt.s32.totalorder %s1727_s12, %s1727_s12 }
   0xd   :  { %p1734_p6 = por %p1733_p5, %p1732_p4 }
   0xf   :  { %p1735_p7 = pnand %p1734_p6, %p1728_p3 }
  0x11   :  { %1738 = shalt.err (!%p1735_p7)
}
  0x12   :  { %s1813_s13 = smov 64   ;;  %s1814_s14 = smov 4  }
  0x13   :  { %38 = dma.hbm_to_vmem [thread:$0]  %s2163_s1, 1024, %s33_s25, [#allocation7], %s1813_s13, %s1813_s13, %s1814_s14  }
  0x14   :  { %s1739_s19 = scalar_lea.hbm %s2162_s0, 1024 }
  0x15   :  { %p1740_p8 = scmp.ne.s32.totalorder %s2162_s0, %s1739_s19  ;;  %p1743_p9 = scmp.lt.u32.totalorder %s1739_s19, %s2162_s0 }
  0x17   :  { %p1745_p10 = pnand %p1743_p9, %p1740_p8 }
  0x19   :  { %1748 = shalt.err (!%p1745_p10)
}
  0x1a   :  { %s1749_s24 = scalar_lea.vmem %s1862_s27, 1024  ;;  %p1754_p12 = scmp.lt.s32.totalorder %s1862_s27, %s1862_s27 }
  0x1b   :  { %p1750_p11 = scmp.ne.s32.totalorder %s1862_s27, %s1749_s24  ;;  %p1755_p13 = scmp.lt.s32.totalorder %s1749_s24, %s1749_s24 }
  0x1d   :  { %p1756_p0 = por %p1755_p13, %p1754_p12 }
  0x1f   :  { %p1757_p1 = pnand %p1756_p0, %p1750_p11 }
  0x21   :  { %1760 = shalt.err (!%p1757_p1)
}
  0x22   :  { %26 = dma.hbm_to_vmem [thread:$0]  %s2162_s0, 1024, %s1862_s27, [#allocation4], %s1813_s13, %s1813_s13, %s1814_s14  }
  0x23   :  { %s1815_s26 = smov [#allocation8]   ;;  %s1761_s8 = scalar_lea.hbm %s2165_s3, 3072 }
  0x24   :  { %s46_s28 = sshll.u32 %s1815_s26, 4  ;;  %p1762_p2 = scmp.ne.s32.totalorder %s2165_s3, %s1761_s8  ;;  %s47_s28 = int_to_ptr.vmem [resolvable:$true] %s46_s28 }
  0x25   :  { %p1765_p3 = scmp.lt.u32.totalorder %s1761_s8, %s2165_s3 }
  0x27   :  { %p1767_p4 = pnand %p1765_p3, %p1762_p2 }
  0x29   :  { %1770 = shalt.err (!%p1767_p4)
}
  0x2a   :  { %s1771_s15 = scalar_lea.vmem %s47_s28, 3072  ;;  %p1776_p6 = scmp.lt.s32.totalorder %s47_s28, %s47_s28 }
  0x2b   :  { %p1772_p5 = scmp.ne.s32.totalorder %s47_s28, %s1771_s15  ;;  %p1777_p7 = scmp.lt.s32.totalorder %s1771_s15, %s1771_s15 }
  0x2d   :  { %p1778_p8 = por %p1777_p7, %p1776_p6 }
  0x2f   :  { %p1779_p9 = pnand %p1778_p8, %p1772_p5 }
  0x31   :  { %1782 = shalt.err (!%p1779_p9)
}
  0x32   :  { %s1816_s0 = smov 192   ;;  %s1817_s27 = smov 12  }
  0x33   :  { %52 = dma.hbm_to_vmem [thread:$0]  %s2165_s3, 3072, %s47_s28, [#allocation7], %s1816_s0, %s1816_s0, %s1817_s27  }
  0x34   :  { %1805 = dma.done.wait [#allocation4], 1024  }
  0x35   :  { %1806 = vsyncadd [#allocation4], 4294966272 }
  0x36   :  { %1807 = dma.done.wait [#allocation7], 4096  }
  0x37   :  { %1808 = vsyncadd [#allocation7], 4294963200  ;;  %v1509_v0 = vld [vmem:[#allocation6] sm:$0xff]   ;;  %v1510_v1 = vld [vmem:[#allocation6 + $0x8] sm:$0xff]   ;;  %v1818_v40 = vmov 0  }
  0x38   :  { %1434 = vmatprep.subr.bf16.mxu0 %v1509_v0  ;;  %v1511_v2 = vld [vmem:[#allocation6 + $0x10] sm:$0xff]   ;;  %v1512_v3 = vld [vmem:[#allocation6 + $0x18] sm:$0xff]   ;;  %v1517_v4 = vld [vmem:[#allocation3] sm:$0xff]   ;;  %637 = vmatprep.mubr.bf16.mxu1 %v1818_v40 }
  0x39   :  { %1435 = vmatpush3.bf16.msra.mxu0 %v1509_v0  ;;  %1450 = vmatprep.mubr.bf16.mxu0 %v1517_v4  ;;  %v1513_v5 = vld [vmem:[#allocation6 + $0x20] sm:$0xff]   ;;  %v1514_v6 = vld [vmem:[#allocation6 + $0x28] sm:$0xff]   ;;  %v1515_v11 = vld [vmem:[#allocation6 + $0x30] sm:$0xff]  }
  0x3a   :  { %1436 = vmatprep.subr.bf16.mxu0 %v1510_v1  ;;  %v1525_v7 = vld [vmem:[#allocation8 + $0x4] ss:$12 sps:$4 sm:$0xff]   ;;  %v1527_v8 = vld [vmem:[#allocation8] ss:$12 sps:$4 sm:$0xff]   ;;  %v1529_v9 = vld [vmem:[#allocation8 + $0x1c] ss:$12 sps:$4 sm:$0xff]  }
  0x3b   :  { %605 = vmatprep.subr.bf16.mxu1 %v1525_v7  ;;  %v1531_v10 = vld [vmem:[#allocation8 + $0x18] ss:$12 sps:$4 sm:$0xff]   ;;  %v1533_v12 = vld [vmem:[#allocation8 + $0x34] ss:$12 sps:$4 sm:$0xff]   ;;  %v1535_v14 = vld [vmem:[#allocation8 + $0x30] ss:$12 sps:$4 sm:$0xff]  }
  0x3c   :  { %606 = vmatpush1.bf16.msra.mxu1 %v1527_v8  ;;  %v1516_v13 = vld [vmem:[#allocation6 + $0x38] sm:$0xff]   ;;  %v1539_v16 = vld [vmem:[#allocation8 + $0x48] ss:$12 sps:$4 sm:$0xff]   ;;  %v1541_v19 = vld [vmem:[#allocation8 + $0x64] ss:$12 sps:$4 sm:$0xff]  }
  0x3d   :  { %1437 = vmatpush3.bf16.msra.mxu0 %v1510_v1  ;;  %607 = vmatprep.subr.bf16.mxu1 %v1529_v9  ;;  %v1537_v15 = vld [vmem:[#allocation8 + $0x4c] ss:$12 sps:$4 sm:$0xff]   ;;  %v1528_v18 = vld [vmem:[#allocation8 + $0x8] ss:$12 sps:$4 sm:$0xff]   ;;  %v1521_v27 = vld [vmem:[#allocation3 + $0x20] sm:$0xff]  }
  0x3e   :  { %1438 = vmatprep.subr.bf16.mxu0 %v1511_v2  ;;  %v1518_v17 = vld [vmem:[#allocation3 + $0x8] sm:$0xff]   ;;  %v1519_v20 = vld [vmem:[#allocation3 + $0x10] sm:$0xff]   ;;  %v1536_v24 = vld [vmem:[#allocation8 + $0x38] ss:$12 sps:$4 sm:$0xff]  }
  0x3f   :  { %v1532_v21 = vld [vmem:[#allocation8 + $0x20] ss:$12 sps:$4 sm:$0xff]   ;;  %v1545_v23 = vld [vmem:[#allocation8 + $0x7c] ss:$12 sps:$4 sm:$0xff]   ;;  %v1547_v25 = vld [vmem:[#allocation8 + $0x78] ss:$12 sps:$4 sm:$0xff]  }
  0x40   :  { %608 = vmatpush1.bf16.msra.mxu1 %v1531_v10  ;;  %v1543_v22 = vld [vmem:[#allocation8 + $0x60] ss:$12 sps:$4 sm:$0xff]   ;;  %v1520_v26 = vld [vmem:[#allocation3 + $0x18] sm:$0xff]   ;;  %v1544_v29 = vld [vmem:[#allocation8 + $0x68] ss:$12 sps:$4 sm:$0xff]  }
  0x41   :  { %1439 = vmatpush3.bf16.msra.mxu0 %v1511_v2  ;;  %609 = vmatprep.subr.bf16.mxu1 %v1533_v12  ;;  %v1540_v28 = vld [vmem:[#allocation8 + $0x50] ss:$12 sps:$4 sm:$0xff]   ;;  %v1522_v30 = vld [vmem:[#allocation3 + $0x28] sm:$0xff]   ;;  %v1549_v34 = vld [vmem:[#allocation8 + $0x94] ss:$12 sps:$4 sm:$0xff]  }
  0x42   :  { %1440 = vmatprep.subr.bf16.mxu0 %v1512_v3  ;;  %v1523_v31 = vld [vmem:[#allocation3 + $0x30] sm:$0xff]   ;;  %v1548_v32 = vld [vmem:[#allocation8 + $0x80] ss:$12 sps:$4 sm:$0xff]   ;;  %v1524_v33 = vld [vmem:[#allocation3 + $0x38] sm:$0xff]  }
  0x43   :  { %v1551_v35 = vld [vmem:[#allocation8 + $0x90] ss:$12 sps:$4 sm:$0xff]   ;;  %v1552_v36 = vld [vmem:[#allocation8 + $0x98] ss:$12 sps:$4 sm:$0xff]   ;;  %v1555_v38 = vld [vmem:[#allocation8 + $0xa8] ss:$12 sps:$4 sm:$0xff]  }
  0x44   :  { %610 = vmatpush1.bf16.msra.mxu1 %v1535_v14  ;;  %v1553_v37 = vld [vmem:[#allocation8 + $0xac] ss:$12 sps:$4 sm:$0xff]   ;;  %v1556_v39 = vld [vmem:[#allocation8 + $0xb0] ss:$12 sps:$4 sm:$0xff]   ;;  %v1915_v41 = vld [vmem:[%s2164_s2] ss:$0 sm:$0xff] }
  0x45   :  { %1441 = vmatpush3.bf16.msra.mxu0 %v1512_v3  ;;  %611 = vmatprep.subr.bf16.mxu1 %v1537_v15 }
  0x46   :  { %1442 = vmatprep.subr.bf16.mxu0 %v1513_v5 }
  0x48   :  { %612 = vmatpush1.bf16.msra.mxu1 %v1539_v16 }
  0x49   :  { %1443 = vmatpush3.bf16.msra.mxu0 %v1513_v5  ;;  %613 = vmatprep.subr.bf16.mxu1 %v1541_v19 }
  0x4a   :  { %1444 = vmatprep.subr.bf16.mxu0 %v1514_v6 }
  0x4c   :  { %614 = vmatpush1.bf16.msra.mxu1 %v1543_v22 }
  0x4d   :  { %1445 = vmatpush3.bf16.msra.mxu0 %v1514_v6  ;;  %615 = vmatprep.subr.bf16.mxu1 %v1545_v23 }
  0x4e   :  { %1446 = vmatprep.subr.bf16.mxu0 %v1515_v11 }
  0x50   :  { %616 = vmatpush1.bf16.msra.mxu1 %v1547_v25 }
  0x51   :  { %1447 = vmatpush3.bf16.msra.mxu0 %v1515_v11  ;;  %617 = vmatprep.subr.bf16.mxu1 %v1549_v34  ;;  %v462_v34 = vlaneseq }
  0x52   :  { %1448 = vmatprep.subr.bf16.mxu0 %v1516_v13 }
  0x54   :  { %618 = vmatpush1.bf16.msra.mxu1 %v1551_v35  ;;  %v1940_v35 = vshrl.u32 %v462_v34, 7 }
  0x55   :  { %1449 = vmatpush3.bf16.msra.mxu0 %v1516_v13  ;;  %619 = vmatprep.subr.bf16.mxu1 %v1553_v37  ;;  %v1946_v37 = vld [vmem:[%s2166_s4] sm:$0x7] }
  0x56   :  { %1466 = vmatprep.subr.bf16.mxu0 %v1528_v18 }
  0x58   :  { %1451 = vmatmul.mubr.bf16.vlgmr.msra.gmra.mrb[0].mxu0 %v1518_v17  ;;  %620 = vmatpush1.bf16.msra.mxu1 %v1555_v38  ;;  %v468_v38 = vsub.s32 1, %v1940_v35 }
  0x59   :  { %1454 = vmatprep.mubr.bf16.mxu0 %v1519_v20  ;;  %1467 = vmatpush3.bf16.msra.mxu0 %v1528_v18 }
  0x5a   :  { %1468 = vmatprep.subr.bf16.mxu0 %v1532_v21 }
  0x5d   :  { %1469 = vmatpush3.bf16.msra.mxu0 %v1532_v21 }
  0x5e   :  { %1470 = vmatprep.subr.bf16.mxu0 %v1536_v24 }
  0x60   :  { %1455 = vmatmul.mubr.bf16.gmra.mrb[4].mxu0 %v1520_v26 }
  0x61   :  { %1458 = vmatprep.mubr.bf16.mxu0 %v1521_v27  ;;  %1471 = vmatpush3.bf16.msra.mxu0 %v1536_v24 }
  0x62   :  { %1472 = vmatprep.subr.bf16.mxu0 %v1540_v28 }
  0x65   :  { %1473 = vmatpush3.bf16.msra.mxu0 %v1540_v28 }
  0x66   :  { %1474 = vmatprep.subr.bf16.mxu0 %v1544_v29 }
  0x68   :  { %1459 = vmatmul.mubr.bf16.gmra.mrb[8].mxu0 %v1522_v30 }
  0x69   :  { %1462 = vmatprep.mubr.bf16.mxu0 %v1523_v31  ;;  %1475 = vmatpush3.bf16.msra.mxu0 %v1544_v29 }
  0x6a   :  { %1476 = vmatprep.subr.bf16.mxu0 %v1548_v32 }
  0x6d   :  { %1477 = vmatpush3.bf16.msra.mxu0 %v1548_v32 }
  0x6e   :  { %1478 = vmatprep.subr.bf16.mxu0 %v1552_v36 }
  0x70   :  { %1463 = vmatmul.mubr.bf16.gmra.mrb[12].mxu0 %v1524_v33 }
  0x71   :  { %1479 = vmatpush3.bf16.msra.mxu0 %v1552_v36  ;;  %v464_v36 = vsub.s32 0, %v1940_v35 }
  0x72   :  { %1480 = vmatprep.subr.bf16.mxu0 %v1556_v39 }
  0x75   :  { %1481 = vmatpush3.bf16.msra.mxu0 %v1556_v39  ;;  %v1950_v39 = vrot.slane %v1946_v37, %v464_v36 }
 0x12b   :  { %v1452_v42 = vpop.f32.mrb[0].mxu0 }
 0x12c   :  { %v390_v43 = vadd.f32 %v1452_v42, %v1915_v41  ;;  %v267_v44 = vpop.f32.mrb[1].mxu0 }
 0x12d   :  { %v388_v45 = vadd.f32 %v1915_v41, %v267_v44  ;;  %v1453_v46 = vpop.f32.mrb[2].mxu0 }
 0x12e   :  { %v391_v47 = vadd.f32 %v1453_v46, %v1915_v41  ;;  %v270_v48 = vpop.f32.mrb[3].mxu0  ;;  %v406_v50 = vmax.f32 %v390_v43, 0.0 }
 0x12f   :  { %v389_v49 = vadd.f32 %v1915_v41, %v270_v48  ;;  %v404_v52 = vmax.f32 %v388_v45, 0.0 }
 0x130   :  { %v407_v51 = vmax.f32 %v391_v47, 0.0 }
 0x131   :  { %v405_v53 = vmax.f32 %v389_v49, 0.0 }
 0x132   :  { %v421_v54 = vpack.c.bf16 %v407_v51, %v406_v50 }
 0x133   :  { %v420_v55 = vpack.c.bf16 %v405_v53, %v404_v52  ;;  %v1456_v56 = vpop.f32.mrb[4].mxu0 }
 0x134   :  { %v394_v57 = vadd.f32 %v1456_v56, %v1915_v41  ;;  %v283_v58 = vpop.f32.mrb[5].mxu0 }
 0x135   :  { %v392_v59 = vadd.f32 %v1915_v41, %v283_v58  ;;  %638 = vmatmul.mubr.bf16.vlgmr.msra.gmra.mrb[0].mxu1 %v420_v55  ;;  %1482 = vmatprep.mubr.bf16.mxu0 %v420_v55  ;;  %v1457_v60 = vpop.f32.mrb[6].mxu0 }
 0x136   :  { %v410_v61 = vmax.f32 %v394_v57, 0.0  ;;  %v395_v62 = vadd.f32 %v1457_v60, %v1915_v41  ;;  %1483 = vmatmul.mubr.bf16.vlgmr.msra.gmra.mrb[16].mxu0 %v421_v54  ;;  %v286_v63 = vpop.f32.mrb[7].mxu0  ;;  %647 = vmatprep.mubr.bf16.mxu1 %v1818_v40 }
 0x137   :  { %v408_v0 = vmax.f32 %v392_v59, 0.0  ;;  %v393_v1 = vadd.f32 %v1915_v41, %v286_v63 }
 0x138   :  { %v411_v2 = vmax.f32 %v395_v62, 0.0 }
 0x139   :  { %v409_v3 = vmax.f32 %v393_v1, 0.0 }
 0x13a   :  { %v423_v4 = vpack.c.bf16 %v411_v2, %v410_v61 }
 0x13b   :  { %v422_v5 = vpack.c.bf16 %v409_v3, %v408_v0  ;;  %v1460_v6 = vpop.f32.mrb[8].mxu0 }
 0x13c   :  { %v398_v7 = vadd.f32 %v1460_v6, %v1915_v41  ;;  %v299_v8 = vpop.f32.mrb[9].mxu0 }
 0x13d   :  { %648 = vmatmul.mubr.bf16.gmra.mrb[4].mxu1 %v421_v54  ;;  %1486 = vmatprep.mubr.bf16.mxu0 %v422_v5  ;;  %v396_v9 = vadd.f32 %v1915_v41, %v299_v8  ;;  %v1461_v10 = vpop.f32.mrb[10].mxu0 }
 0x13e   :  { %1487 = vmatmul.mubr.bf16.gmra.mrb[20].mxu0 %v423_v4  ;;  %v414_v11 = vmax.f32 %v398_v7, 0.0  ;;  %657 = vmatprep.mubr.bf16.mxu1 %v1818_v40  ;;  %v399_v12 = vadd.f32 %v1461_v10, %v1915_v41  ;;  %v302_v13 = vpop.f32.mrb[11].mxu0 }
 0x13f   :  { %v412_v14 = vmax.f32 %v396_v9, 0.0  ;;  %v397_v15 = vadd.f32 %v1915_v41, %v302_v13 }
 0x140   :  { %v415_v16 = vmax.f32 %v399_v12, 0.0 }
 0x141   :  { %v413_v17 = vmax.f32 %v397_v15, 0.0 }
 0x142   :  { %v425_v18 = vpack.c.bf16 %v415_v16, %v414_v11 }
 0x143   :  { %v424_v19 = vpack.c.bf16 %v413_v17, %v412_v14  ;;  %v1464_v20 = vpop.f32.mrb[12].mxu0 }
 0x144   :  { %v402_v21 = vadd.f32 %v1464_v20, %v1915_v41  ;;  %v315_v22 = vpop.f32.mrb[13].mxu0 }
 0x145   :  { %658 = vmatmul.mubr.bf16.gmra.mrb[8].mxu1 %v422_v5  ;;  %1490 = vmatprep.mubr.bf16.mxu0 %v424_v19  ;;  %v400_v23 = vadd.f32 %v1915_v41, %v315_v22  ;;  %v1465_v24 = vpop.f32.mrb[14].mxu0 }
 0x146   :  { %667 = vmatprep.mubr.bf16.mxu1 %v1818_v40  ;;  %1491 = vmatmul.mubr.bf16.gmra.mrb[24].mxu0 %v425_v18  ;;  %v418_v25 = vmax.f32 %v402_v21, 0.0  ;;  %v403_v26 = vadd.f32 %v1465_v24, %v1915_v41  ;;  %v318_v27 = vpop.f32.mrb[15].mxu0 }
 0x147   :  { %v416_v28 = vmax.f32 %v400_v23, 0.0  ;;  %v401_v29 = vadd.f32 %v1915_v41, %v318_v27  ;;  %v1953_v41 = vrot.slane %v1946_v37, %v468_v38  ;;  %v472_v27 = vsub.s32 2, %v1940_v35 }
 0x148   :  { %v419_v30 = vmax.f32 %v403_v26, 0.0 }
 0x149   :  { %v417_v31 = vmax.f32 %v401_v29, 0.0  ;;  %v1993_v36 = vrot.slane %v1946_v37, %v472_v27 }
 0x14a   :  { %v427_v32 = vpack.c.bf16 %v419_v30, %v418_v25 }
 0x14b   :  { %v426_v33 = vpack.c.bf16 %v417_v31, %v416_v28 }
 0x14d   :  { %668 = vmatmul.mubr.bf16.gmra.mrb[12].mxu1 %v423_v4  ;;  %1494 = vmatprep.mubr.bf16.mxu0 %v426_v33 }
 0x14e   :  { %677 = vmatprep.mubr.bf16.mxu1 %v1818_v40  ;;  %1495 = vmatmul.mubr.bf16.gmra.mrb[28].mxu0 %v427_v32 }
 0x155   :  { %678 = vmatmul.mubr.bf16.gmra.mrb[16].mxu1 %v424_v19 }
 0x156   :  { %687 = vmatprep.mubr.bf16.mxu1 %v1818_v40 }
 0x15d   :  { %688 = vmatmul.mubr.bf16.gmra.mrb[20].mxu1 %v425_v18 }
 0x15e   :  { %697 = vmatprep.mubr.bf16.mxu1 %v1818_v40 }
 0x165   :  { %698 = vmatmul.mubr.bf16.gmra.mrb[24].mxu1 %v426_v33 }
 0x166   :  { %707 = vmatprep.mubr.bf16.mxu1 %v1818_v40 }
 0x16d   :  { %708 = vmatmul.mubr.bf16.gmra.mrb[28].mxu1 %v427_v32 }
 0x208   :  { %v639_v40 = vpop.f32.mrb[0].mxu1 }
 0x209   :  { %v640_v42 = vadd.f32 %v639_v40, %v1950_v39  ;;  %v641_v43 = vpop.f32.mrb[1].mxu1  ;;  %v1956_v44 = vpop.f32.mrb[16].mxu0 }
 0x20a   :  { %v642_v45 = vadd.f32 %v641_v43, %v1953_v41  ;;  %v643_v46 = vpop.f32.mrb[2].mxu1  ;;  %v1959_v47 = vpop.f32.mrb[17].mxu0 }
 0x20b   :  { %v1368_v48 = vmul.f32 -1.442695, %v640_v42  ;;  %v644_v49 = vadd.f32 %v643_v46, %v1950_v39  ;;  %v645_v50 = vpop.f32.mrb[3].mxu1  ;;  %v1962_v51 = vpop.f32.mrb[18].mxu0 }
 0x20c   :  { %v1384_v52 = vmul.f32 -1.442695, %v642_v45  ;;  %v646_v53 = vadd.f32 %v645_v50, %v1953_v41  ;;  %v1965_v54 = vpop.f32.mrb[19].mxu0 }
 0x20d   :  { %1557 = vpow2.f32 %v1368_v48  ;;  %v1369_v55 = vmul.f32 -1.442695, %v644_v49  ;;  %v2001_v49 = vld [vmem:[%s2167_s5] ss:$0 sm:$0xff] }
 0x20e   :  { %1559 = vpow2.f32 %v1384_v52  ;;  %v1385_v56 = vmul.f32 -1.442695, %v646_v53 }
 0x20f   :  { %1561 = vpow2.f32 %v1369_v55 }
 0x210   :  { %1563 = vpow2.f32 %v1385_v56  ;;  %v649_v57 = vpop.f32.mrb[4].mxu1 }
 0x211   :  { %v650_v58 = vadd.f32 %v649_v57, %v1950_v39  ;;  %v651_v59 = vpop.f32.mrb[5].mxu1  ;;  %v1968_v60 = vpop.f32.mrb[20].mxu0 }
 0x212   :  { %v652_v61 = vadd.f32 %v651_v59, %v1953_v41  ;;  %v653_v62 = vpop.f32.mrb[6].mxu1  ;;  %v1971_v63 = vpop.f32.mrb[21].mxu0 }
 0x213   :  { %v1370_v0 = vmul.f32 -1.442695, %v650_v58  ;;  %v654_v1 = vadd.f32 %v653_v62, %v1950_v39  ;;  %v655_v2 = vpop.f32.mrb[7].mxu1  ;;  %v1974_v3 = vpop.f32.mrb[22].mxu0  ;;  %v753_v62 = vadd.f32 %v1959_v47, %v1993_v36 }
 0x214   :  { %v1386_v4 = vmul.f32 -1.442695, %v652_v61  ;;  %v656_v5 = vadd.f32 %v655_v2, %v1953_v41  ;;  %v1977_v6 = vpop.f32.mrb[23].mxu0 }
 0x215   :  { %1565 = vpow2.f32 %v1370_v0  ;;  %v1371_v7 = vmul.f32 -1.442695, %v654_v1 }
 0x216   :  { %1567 = vpow2.f32 %v1386_v4  ;;  %v1387_v8 = vmul.f32 -1.442695, %v656_v5 }
 0x217   :  { %v1558_v9 = vpop.eup %1557  ;;  %1569 = vpow2.f32 %v1371_v7 }
 0x218   :  { %v1560_v10 = vpop.eup %1559  ;;  %v863_v11 = vadd.f32 1.0, %v1558_v9  ;;  %v659_v12 = vpop.f32.mrb[8].mxu1  ;;  %1571 = vpow2.f32 %v1387_v8  ;;  %v756_v8 = vadd.f32 %v1965_v54, %v1993_v36 }
 0x219   :  { %v1562_v13 = vpop.eup %1561  ;;  %v660_v14 = vadd.f32 %v659_v12, %v1950_v39  ;;  %v661_v15 = vpop.f32.mrb[9].mxu1  ;;  %v959_v21 = vadd.f32 1.0, %v1560_v10 }
 0x21a   :  { %v1980_v16 = vpop.f32.mrb[24].mxu0  ;;  %v1564_v17 = vpop.eup %1563  ;;  %1573 = vrcp.f32 %v863_v11  ;;  %v864_v18 = vadd.f32 1.0, %v1562_v13  ;;  %v662_v23 = vadd.f32 %v661_v15, %v1953_v41 }
 0x21b   :  { %v663_v19 = vpop.f32.mrb[10].mxu1  ;;  %v1982_v20 = vpop.f32.mrb[25].mxu0  ;;  %v1372_v22 = vmul.f32 -1.442695, %v660_v14  ;;  %v960_v29 = vadd.f32 1.0, %v1564_v17 }
 0x21c   :  { %v664_v24 = vadd.f32 %v663_v19, %v1950_v39  ;;  %v665_v25 = vpop.f32.mrb[11].mxu1  ;;  %v1986_v26 = vpop.f32.mrb[26].mxu0  ;;  %1575 = vrcp.f32 %v864_v18  ;;  %v1388_v33 = vmul.f32 -1.442695, %v662_v23 }
 0x21d   :  { %v1989_v28 = vpop.f32.mrb[27].mxu0  ;;  %v666_v31 = vadd.f32 %v665_v25, %v1953_v41  ;;  %1577 = vpow2.f32 %v1372_v22 }
 0x21e   :  { %v1373_v30 = vmul.f32 -1.442695, %v664_v24  ;;  %1579 = vrcp.f32 %v959_v21 }
 0x21f   :  { %v1566_v32 = vpop.eup %1565  ;;  %v1389_v43 = vmul.f32 -1.442695, %v666_v31 }
 0x220   :  { %v1568_v34 = vpop.eup %1567  ;;  %v865_v38 = vadd.f32 1.0, %v1566_v32  ;;  %1581 = vpow2.f32 %v1373_v30  ;;  %v669_v40 = vpop.f32.mrb[12].mxu1 }
 0x221   :  { %v1570_v42 = vpop.eup %1569  ;;  %1583 = vrcp.f32 %v960_v29  ;;  %v670_v45 = vadd.f32 %v669_v40, %v1950_v39  ;;  %v671_v46 = vpop.f32.mrb[13].mxu1  ;;  %v961_v55 = vadd.f32 1.0, %v1568_v34  ;;  %v761_v34 = vadd.f32 %v1956_v44, %v1993_v36 }
 0x222   :  { %v1996_v48 = vpop.f32.mrb[28].mxu0  ;;  %1585 = vrcp.f32 %v865_v38  ;;  %v866_v50 = vadd.f32 1.0, %v1570_v42  ;;  %v673_v37 = vpop.f32.mrb[14].mxu1  ;;  %v672_v0 = vadd.f32 %v671_v46, %v1953_v41 }
 0x223   :  { %v2003_v52 = vpop.f32.mrb[29].mxu0  ;;  %v1572_v53 = vpop.eup %1571  ;;  %1587 = vpow2.f32 %v1388_v33  ;;  %v1374_v56 = vmul.f32 -1.442695, %v670_v45  ;;  %v674_v57 = vadd.f32 %v673_v37, %v1950_v39 }
 0x224   :  { %v675_v58 = vpop.f32.mrb[15].mxu1  ;;  %v1497_v59 = vpop.f32.mrb[30].mxu0  ;;  %1589 = vrcp.f32 %v866_v50  ;;  %v962_v9 = vadd.f32 1.0, %v1572_v53  ;;  %v1390_v13 = vmul.f32 -1.442695, %v672_v0  ;;  %v764_v50 = vadd.f32 %v1962_v51, %v1993_v36 }
 0x225   :  { %v1574_v61 = vpop.eup %1573  ;;  %v2009_v1 = vpop.f32.mrb[31].mxu0  ;;  %1591 = vpow2.f32 %v1389_v43  ;;  %v1375_v4 = vmul.f32 -1.442695, %v674_v57  ;;  %v2013_v5 = vadd.f32 %v1497_v59, %v1993_v36  ;;  %v676_v11 = vadd.f32 %v675_v58, %v1953_v41 }
 0x226   :  { %v1014_v2 = vmul.f32 %v1574_v61, %v2001_v49  ;;  %v1576_v7 = vpop.eup %1575  ;;  %1593 = vpow2.f32 %v1374_v56 }
 0x227   :  { %v1015_v47 = vmul.f32 %v1576_v7, %v2001_v49  ;;  %1595 = vrcp.f32 %v961_v55  ;;  %v1578_v12 = vpop.eup %1577  ;;  %v1391_v27 = vmul.f32 -1.442695, %v676_v11 }
 0x228   :  { %v1030_v10 = vadd.f32 %v1014_v2, %v753_v62  ;;  %1597 = vpow2.f32 %v1375_v4  ;;  %v679_v14 = vpop.f32.mrb[16].mxu1  ;;  %v1580_v15 = vpop.eup %1579  ;;  %v867_v18 = vadd.f32 1.0, %v1578_v12 }
 0x229   :  { %v1031_v17 = vadd.f32 %v1015_v47, %v756_v8  ;;  %v680_v19 = vadd.f32 %v679_v14, %v1950_v39  ;;  %v681_v21 = vpop.f32.mrb[17].mxu1  ;;  %v1062_v57 = vsub.f32 1.0, %v1580_v15 }
 0x22a   :  { %1599 = vtanh.f32 %v1030_v10  ;;  %v1582_v54 = vpop.eup %1581  ;;  %v682_v22 = vadd.f32 %v681_v21, %v1953_v41  ;;  %v683_v23 = vpop.f32.mrb[18].mxu1 }
 0x22b   :  { %1601 = vrcp.f32 %v962_v9  ;;  %v1584_v24 = vpop.eup %1583  ;;  %v868_v25 = vadd.f32 1.0, %v1582_v54  ;;  %v684_v29 = vadd.f32 %v683_v23, %v1950_v39  ;;  %v685_v30 = vpop.f32.mrb[19].mxu1  ;;  %v1376_v32 = vmul.f32 -1.442695, %v680_v19 }
 0x22c   :  { %1603 = vtanh.f32 %v1031_v17  ;;  %v1586_v31 = vpop.eup %1585  ;;  %v1392_v38 = vmul.f32 -1.442695, %v682_v22  ;;  %v686_v45 = vadd.f32 %v685_v30, %v1953_v41  ;;  %v1063_v8 = vsub.f32 1.0, %v1584_v24 }
 0x22d   :  { %1605 = vrcp.f32 %v867_v18  ;;  %v1588_v33 = vpop.eup %1587  ;;  %v1016_v40 = vmul.f32 %v1586_v31, %v2001_v49  ;;  %v1377_v43 = vmul.f32 -1.442695, %v684_v29 }
 0x22e   :  { %1607 = vpow2.f32 %v1390_v13  ;;  %v1590_v42 = vpop.eup %1589  ;;  %v963_v44 = vadd.f32 1.0, %v1588_v33  ;;  %v1393_v2 = vmul.f32 -1.442695, %v686_v45  ;;  %v2041_v13 = vld [vmem:[%s2168_s6] ss:$0 sm:$0xff]  ;;  %s1821_s6 = smov [#allocation9]  }
 0x22f   :  { %1609 = vrcp.f32 %v868_v25  ;;  %v1592_v46 = vpop.eup %1591  ;;  %v1017_v37 = vmul.f32 %v1590_v42, %v2001_v49  ;;  %v2029_v53 = vadd.f32 %v1016_v40, %v761_v34  ;;  %s1314_s22 = sshll.u32 %s1821_s6, 4  ;;  %s1315_s22 = int_to_ptr.vmem [resolvable:$true] %s1314_s22 }
 0x230   :  { %1611 = vpow2.f32 %v1391_v27  ;;  %v1594_v55 = vpop.eup %1593  ;;  %v689_v56 = vpop.f32.mrb[20].mxu1  ;;  %v964_v10 = vadd.f32 1.0, %v1592_v46  ;;  %v769_v27 = vadd.f32 %v1971_v63, %v1993_v36  ;;  %v772_v63 = vadd.f32 %v1977_v6, %v1993_v36  ;;  %s1783_s23 = scalar_lea.vmem %s1315_s22, 1024  ;;  %p1788_p11 = scmp.lt.s32.totalorder %s1315_s22, %s1315_s22 }
 0x231   :  { %1613 = vpow2.f32 %v1376_v32  ;;  %v2031_v58 = vpop.eup %1595  ;;  %v869_v59 = vadd.f32 1.0, %v1594_v55  ;;  %v690_v61 = vadd.f32 %v689_v56, %v1950_v39  ;;  %v691_v62 = vpop.f32.mrb[21].mxu1  ;;  %v2034_v0 = vadd.f32 %v1017_v37, %v764_v50  ;;  %p1784_p10 = scmp.ne.s32.totalorder %s1315_s22, %s1783_s23  ;;  %p1789_p12 = scmp.lt.s32.totalorder %s1783_s23, %s1783_s23 }
 0x232   :  { %1615 = vpow2.f32 %v1392_v38  ;;  %v1598_v51 = vpop.eup %1597  ;;  %v692_v4 = vadd.f32 %v691_v62, %v1953_v41  ;;  %v693_v7 = vpop.f32.mrb[22].mxu1 }
 0x233   :  { %1617 = vpow2.f32 %v1377_v43  ;;  %v870_v47 = vadd.f32 1.0, %v1598_v51  ;;  %v694_v11 = vadd.f32 %v693_v7, %v1950_v39  ;;  %v695_v12 = vpop.f32.mrb[23].mxu1  ;;  %v1378_v15 = vmul.f32 -1.442695, %v690_v61  ;;  %p1790_p13 = por %p1789_p12, %p1788_p11 }
 0x234   :  { %v1600_v9 = vpop.eup %1599  ;;  %1619 = vrcp.f32 %v869_v59  ;;  %v696_v17 = vadd.f32 %v695_v12, %v1953_v41  ;;  %v1394_v21 = vmul.f32 -1.442695, %v692_v4  ;;  %v777_v7 = vadd.f32 %v1968_v60, %v1993_v36 }
 0x235   :  { %v2043_v14 = vpop.eup %1601  ;;  %1621 = vrcp.f32 %v963_v44  ;;  %v1078_v18 = vmul.f32 %v1600_v9, %v1062_v57  ;;  %v1379_v22 = vmul.f32 -1.442695, %v694_v11  ;;  %p1791_p0 = pnand %p1790_p13, %p1784_p10 }
 0x236   :  { %v1604_v19 = vpop.eup %1603  ;;  %1623 = vrcp.f32 %v870_v47  ;;  %v1395_v30 = vmul.f32 -1.442695, %v696_v17  ;;  %v780_v47 = vadd.f32 %v1974_v3, %v1993_v36 }
 0x237   :  { %v1606_v54 = vpop.eup %1605  ;;  %1625 = vpow2.f32 %v1393_v2  ;;  %v1101_v23 = vmul.f32 %v2041_v13, %v1078_v18  ;;  %v1079_v24 = vmul.f32 %v1604_v19, %v1063_v8 }
 0x238   :  { %v1608_v25 = vpop.eup %1607  ;;  %v1018_v29 = vmul.f32 %v1606_v54, %v2001_v49  ;;  %1627 = vrcp.f32 %v964_v10  ;;  %v699_v32 = vpop.f32.mrb[24].mxu1 }
 0x239   :  { %v1610_v31 = vpop.eup %1609  ;;  %1629 = vpow2.f32 %v1378_v15  ;;  %1117 = vadd.xlane.f32.xlu0 %v1101_v23  ;;  %v700_v38 = vadd.f32 %v699_v32, %v1950_v39  ;;  %v701_v40 = vpop.f32.mrb[25].mxu1  ;;  %v965_v45 = vadd.f32 1.0, %v1608_v25  ;;  %v1102_v50 = vmul.f32 %v2041_v13, %v1079_v24 }
 0x23a   :  { %v1612_v33 = vpop.eup %1611  ;;  %v1019_v34 = vmul.f32 %v1610_v31, %v2001_v49  ;;  %1631 = vpow2.f32 %v1394_v21  ;;  %v2052_v42 = vadd.f32 %v1018_v29, %v769_v27  ;;  %v703_v46 = vpop.f32.mrb[26].mxu1  ;;  %v702_v44 = vadd.f32 %v701_v40, %v1953_v41 }
 0x23b   :  { %v1614_v43 = vpop.eup %1613  ;;  %1633 = vpow2.f32 %v1379_v22  ;;  %v704_v56 = vadd.f32 %v703_v46, %v1950_v39  ;;  %v705_v57 = vpop.f32.mrb[27].mxu1  ;;  %v1380_v61 = vmul.f32 -1.442695, %v700_v38  ;;  %v966_v6 = vadd.f32 1.0, %v1612_v33 }
 0x23c   :  { %v1616_v37 = vpop.eup %1615  ;;  %v871_v55 = vadd.f32 1.0, %v1614_v43  ;;  %1635 = vpow2.f32 %v1395_v30  ;;  %v2060_v2 = vadd.f32 %v1019_v34, %v772_v63  ;;  %v1396_v11 = vmul.f32 -1.442695, %v702_v44 }
 0x23d   :  { %v1618_v59 = vpop.eup %1617  ;;  %1119 = vadd.xlane.f32.xlu0 %v1102_v50  ;;  %1637 = vtanh.f32 %v2029_v53  ;;  %v1381_v9 = vmul.f32 -1.442695, %v704_v56  ;;  %v967_v53 = vadd.f32 1.0, %v1616_v37  ;;  %v706_v17 = vadd.f32 %v705_v57, %v1953_v41 }
 0x23e   :  { %v1620_v62 = vpop.eup %1619  ;;  %1639 = vrcp.f32 %v871_v55  ;;  %v872_v51 = vadd.f32 1.0, %v1618_v59  ;;  %v1064_v40 = vsub.f32 1.0, %v2031_v58  ;;  %v785_v44 = vadd.f32 %v1982_v20, %v1993_v36 }
 0x23f   :  { %v2062_v4 = vpop.eup %1621  ;;  %v1020_v8 = vmul.f32 %v1620_v62, %v2001_v49  ;;  %1641 = vrcp.f32 %v965_v45  ;;  %v1397_v32 = vmul.f32 -1.442695, %v706_v17  ;;  %v788_v59 = vadd.f32 %v1989_v28, %v1993_v36 }
 0x240   :  { %v1624_v10 = vpop.eup %1623  ;;  %1643 = vrcp.f32 %v872_v51  ;;  %v709_v18 = vpop.f32.mrb[28].mxu1 }
 0x241   :  { %v1626_v12 = vpop.eup %1625  ;;  %v1021_v15 = vmul.f32 %v1624_v10, %v2001_v49  ;;  %1645 = vpow2.f32 %v1380_v61  ;;  %v2071_v19 = vadd.f32 %v1020_v8, %v777_v7  ;;  %v710_v21 = vadd.f32 %v709_v18, %v1950_v39  ;;  %v711_v54 = vpop.f32.mrb[29].mxu1 }
 0x242   :  { %v2073_v60 = vpop.eup %1627  ;;  %1647 = vrcp.f32 %v966_v6  ;;  %v968_v3 = vadd.f32 1.0, %v1626_v12  ;;  %v713_v23 = vpop.f32.mrb[30].mxu1  ;;  %v712_v46 = vadd.f32 %v711_v54, %v1953_v41  ;;  %v796_v54 = vadd.f32 %v1986_v26, %v1993_v36 }
 0x243   :  { %v1630_v22 = vpop.eup %1629  ;;  %1649 = vpow2.f32 %v1381_v9  ;;  %v2076_v24 = vadd.f32 %v1021_v15, %v780_v47  ;;  %v714_v29 = vadd.f32 %v713_v23, %v1950_v39  ;;  %v715_v30 = vpop.f32.mrb[31].mxu1  ;;  %v1382_v43 = vmul.f32 -1.442695, %v710_v21 }
 0x244   :  { %v1632_v25 = vpop.eup %1631  ;;  %1651 = vrcp.f32 %v967_v53  ;;  %v873_v27 = vadd.f32 1.0, %v1630_v22  ;;  %v716_v33 = vadd.f32 %v715_v30, %v1953_v41  ;;  %v1398_v6 = vmul.f32 -1.442695, %v712_v46 }
 0x245   :  { %v1634_v31 = vpop.eup %1633  ;;  %1653 = vpow2.f32 %v1396_v11  ;;  %v969_v45 = vadd.f32 1.0, %v1632_v25  ;;  %v1383_v37 = vmul.f32 -1.442695, %v714_v29  ;;  %v793_v15 = vadd.f32 %v1980_v16, %v1993_v36 }
 0x246   :  { %v1636_v34 = vpop.eup %1635  ;;  %1655 = vrcp.f32 %v873_v27  ;;  %v874_v38 = vadd.f32 1.0, %v1634_v31  ;;  %v1399_v47 = vmul.f32 -1.442695, %v716_v33  ;;  %v1066_v46 = vsub.f32 1.0, %v2062_v4 }
 0x247   :  { %v1638_v63 = vpop.eup %1637  ;;  %1657 = vrcp.f32 %v968_v3  ;;  %v970_v57 = vadd.f32 1.0, %v1636_v34 }
 0x248   :  { %v1640_v50 = vpop.eup %1639  ;;  %1659 = vrcp.f32 %v874_v38  ;;  %v1080_v39 = vmul.f32 %v1638_v63, %v1064_v40 }
 0x249   :  { %v2082_v55 = vpop.eup %1641  ;;  %v1022_v56 = vmul.f32 %v1640_v50, %v2001_v49  ;;  %1661 = vpow2.f32 %v1397_v32  ;;  %v1067_v50 = vsub.f32 1.0, %v2073_v60 }
 0x24a   :  { %v1644_v58 = vpop.eup %1643  ;;  %v1103_v61 = vmul.f32 %v2041_v13, %v1080_v39  ;;  %1663 = vpow2.f32 %v1382_v43  ;;  %v1068_v39 = vsub.f32 1.0, %v2082_v55 }
 0x24b   :  { %v1646_v41 = vpop.eup %1645  ;;  %v1023_v62 = vmul.f32 %v1644_v58, %v2001_v49  ;;  %1665 = vrcp.f32 %v969_v45  ;;  %v1038_v51 = vadd.f32 %v1022_v56, %v785_v44 }
 0x24c   :  { %v2091_v7 = vpop.eup %1647  ;;  %v875_v20 = vadd.f32 1.0, %v1646_v41  ;;  %1121 = vadd.xlane.f32.xlu1 %v1103_v61  ;;  %1667 = vpow2.f32 %v1383_v37 }
 0x24d   :  { %v1650_v8 = vpop.eup %1649  ;;  %1669 = vrcp.f32 %v970_v57  ;;  %v1039_v9 = vadd.f32 %v1023_v62, %v788_v59  ;;  %v1069_v59 = vsub.f32 1.0, %v2091_v7 }
 0x24e   :  { %v2093_v10 = vpop.eup %1651  ;;  %1671 = vrcp.f32 %v875_v20  ;;  %v876_v28 = vadd.f32 1.0, %v1650_v8  ;;  %v809_v20 = vadd.f32 %v1996_v48, %v1993_v36 }
 0x24f   :  { %v1654_v53 = vpop.eup %1653  ;;  %1673 = vpow2.f32 %v1398_v6 }
 0x250   :  { %v1656_v11 = vpop.eup %1655  ;;  %1675 = vrcp.f32 %v876_v28  ;;  %v971_v25 = vadd.f32 1.0, %v1654_v53  ;;  %v1070_v28 = vsub.f32 1.0, %v2093_v10 }
 0x251   :  { %v2095_v12 = vpop.eup %1657  ;;  %v1024_v17 = vmul.f32 %v1656_v11, %v2001_v49  ;;  %1677 = vtanh.f32 %v2034_v0 }
 0x252   :  { %v1660_v18 = vpop.eup %1659  ;;  %1679 = vpow2.f32 %v1399_v47 }
 0x253   :  { %v1662_v21 = vpop.eup %1661  ;;  %v1025_v22 = vmul.f32 %v1660_v18, %v2001_v49  ;;  %1681 = vtanh.f32 %v2052_v42  ;;  %v1040_v3 = vadd.f32 %v1024_v17, %v793_v15 }
 0x254   :  { %v1664_v23 = vpop.eup %1663  ;;  %1683 = vtanh.f32 %v2060_v2  ;;  %v972_v30 = vadd.f32 1.0, %v1662_v21  ;;  %v801_v2 = vadd.f32 %v2003_v52, %v1993_v36 }
 0x255   :  { %v2106_v16 = vpop.eup %1665  ;;  %v877_v27 = vadd.f32 1.0, %v1664_v23  ;;  %1685 = vtanh.f32 %v2071_v19  ;;  %v1041_v0 = vadd.f32 %v1025_v22, %v796_v54  ;;  %v1065_v19 = vsub.f32 1.0, %v2043_v14 }
 0x256   :  { %v1668_v29 = vpop.eup %1667  ;;  %1687 = vtanh.f32 %v2076_v24  ;;  %v804_v24 = vadd.f32 %v2009_v1, %v1993_v36  ;;  %v1071_v36 = vsub.f32 1.0, %v2095_v12  ;;  %v1072_v21 = vsub.f32 1.0, %v2106_v16 }
 0x257   :  { %v2110_v26 = vpop.eup %1669  ;;  %1689 = vrcp.f32 %v877_v27  ;;  %v878_v31 = vadd.f32 1.0, %v1668_v29 }
 0x258   :  { %v1672_v42 = vpop.eup %1671  ;;  %1691 = vrcp.f32 %v971_v25 }
 0x259   :  { %v1674_v32 = vpop.eup %1673  ;;  %v1026_v33 = vmul.f32 %v1672_v42, %v2001_v49  ;;  %1693 = vrcp.f32 %v878_v31 }
 0x25a   :  { %v1676_v34 = vpop.eup %1675  ;;  %1695 = vrcp.f32 %v972_v30  ;;  %v973_v44 = vadd.f32 1.0, %v1674_v32 }
 0x25b   :  { %v1678_v38 = vpop.eup %1677  ;;  %v1027_v40 = vmul.f32 %v1676_v34, %v2001_v49  ;;  %1697 = vtanh.f32 %v1038_v51  ;;  %v1042_v43 = vadd.f32 %v1026_v33, %v801_v2 }
 0x25c   :  { %v1680_v63 = vpop.eup %1679  ;;  %v1081_v45 = vmul.f32 %v1678_v38, %v1065_v19  ;;  %1699 = vtanh.f32 %v1039_v9 }
 0x25d   :  { %v1682_v52 = vpop.eup %1681  ;;  %1701 = vtanh.f32 %v1040_v3  ;;  %v1043_v14 = vadd.f32 %v1027_v40, %v804_v24  ;;  %v974_v61 = vadd.f32 1.0, %v1680_v63 }
 0x25e   :  { %v1684_v37 = vpop.eup %1683  ;;  %v1104_v1 = vmul.f32 %v2041_v13, %v1081_v45  ;;  %v1082_v56 = vmul.f32 %v1682_v52, %v1066_v46  ;;  %1703 = vtanh.f32 %v1041_v0  ;;  %v1819_v52 = vmov 839922192  }
 0x25f   :  { %v1686_v57 = vpop.eup %1685  ;;  %v1083_v58 = vmul.f32 %v1684_v37, %v1067_v50  ;;  %1705 = vtanh.f32 %v1042_v43  ;;  %v1166_v50 = vunpack.c.l.s4 %v1819_v52 }
 0x260   :  { %v1688_v4 = vpop.eup %1687  ;;  %1123 = vadd.xlane.f32.xlu1 %v1104_v1  ;;  %v1105_v60 = vmul.f32 %v2041_v13, %v1082_v56  ;;  %v1084_v41 = vmul.f32 %v1686_v57, %v1068_v39  ;;  %1707 = vtanh.f32 %v1043_v14  ;;  %v1820_v39 = vmov 1985246804  }
 0x261   :  { %v1690_v55 = vpop.eup %1689  ;;  %v1106_v62 = vmul.f32 %v2041_v13, %v1083_v58  ;;  %v1085_v6 = vmul.f32 %v1688_v4, %v1069_v59  ;;  %1709 = vrcp.f32 %v973_v44  ;;  %v1173_v14 = vunpack.c.l.s4 %v1820_v39 }
 0x262   :  { %v1692_v51 = vpop.eup %1691  ;;  %v1028_v8 = vmul.f32 %v1690_v55, %v2001_v49  ;;  %1125 = vadd.xlane.f32.xlu0 %v1105_v60  ;;  %v1107_v7 = vmul.f32 %v2041_v13, %v1084_v41  ;;  %1711 = vrcp.f32 %v974_v61  ;;  %v1167_v37 = vunpack.c.0.s8 %v1166_v50 }
 0x263   :  { %v1694_v9 = vpop.eup %1693  ;;  %v1108_v11 = vmul.f32 %v2041_v13, %v1085_v6  ;;  %v1074_v27 = vsub.f32 1.0, %v1692_v51  ;;  %v1174_v44 = vunpack.c.0.s8 %v1173_v14 }
 0x264   :  { %v1696_v47 = vpop.eup %1695  ;;  %v1029_v53 = vmul.f32 %v1694_v9, %v2001_v49  ;;  %1127 = vadd.xlane.f32.xlu1 %v1106_v62  ;;  %v1044_v15 = vadd.f32 %v1028_v8, %v809_v20  ;;  %v1073_v49 = vsub.f32 1.0, %v2110_v26  ;;  %v1170_v56 = vsub.s32 %v1167_v37, %v1940_v35 }
 0x265   :  { %v1698_v17 = vpop.eup %1697  ;;  %v1075_v30 = vsub.f32 1.0, %v1696_v47  ;;  %v1177_v57 = vsub.s32 %v1174_v44, %v1940_v35 }
 0x266   :  { %v1700_v48 = vpop.eup %1699  ;;  %1129 = vadd.xlane.f32.xlu0 %v1107_v7  ;;  %v1086_v18 = vmul.f32 %v1698_v17, %v1070_v28  ;;  %1713 = vtanh.f32 %v1044_v15  ;;  %v1045_v54 = vadd.f32 %v1029_v53, %v2013_v5 }
 0x267   :  { %v1702_v10 = vpop.eup %1701  ;;  %v1087_v22 = vmul.f32 %v1700_v48, %v1071_v36 }
 0x268   :  { %v1704_v3 = vpop.eup %1703  ;;  %1131 = vadd.xlane.f32.xlu1 %v1108_v11  ;;  %v1109_v23 = vmul.f32 %v2041_v13, %v1086_v18  ;;  %v1088_v25 = vmul.f32 %v1702_v10, %v1072_v21  ;;  %1715 = vtanh.f32 %v1045_v54 }
 0x269   :  { %v1706_v12 = vpop.eup %1705  ;;  %v1110_v0 = vmul.f32 %v2041_v13, %v1087_v22  ;;  %v1089_v29 = vmul.f32 %v1704_v3, %v1073_v49 }
 0x26a   :  { %v1708_v16 = vpop.eup %1707  ;;  %1133 = vadd.xlane.f32.xlu0 %v1109_v23  ;;  %v1111_v5 = vmul.f32 %v2041_v13, %v1088_v25  ;;  %v1090_v31 = vmul.f32 %v1706_v12, %v1074_v27 }
 0x26b   :  { %v1091_v42 = vmul.f32 %v1708_v16, %v1075_v30  ;;  %v1710_v32 = vpop.eup %1709  ;;  %v1112_v26 = vmul.f32 %v2041_v13, %v1089_v29 }
 0x26c   :  { %1135 = vadd.xlane.f32.xlu1 %v1110_v0  ;;  %v1712_v2 = vpop.eup %1711  ;;  %v1113_v33 = vmul.f32 %v2041_v13, %v1090_v31  ;;  %v1076_v34 = vsub.f32 1.0, %v1710_v32 }
 0x26d   :  { %v1114_v38 = vmul.f32 %v2041_v13, %v1091_v42  ;;  %v1077_v40 = vsub.f32 1.0, %v1712_v2 }
 0x26e   :  { %1137 = vadd.xlane.f32.xlu0 %v1111_v5 }
 0x270   :  { %v1714_v19 = vpop.eup %1713  ;;  %1139 = vadd.xlane.f32.xlu1 %v1112_v26 }
 0x271   :  { %v1092_v24 = vmul.f32 %v1714_v19, %v1076_v34 }
 0x272   :  { %v1716_v43 = vpop.eup %1715  ;;  %1141 = vadd.xlane.f32.xlu0 %v1113_v33 }
 0x273   :  { %v1115_v63 = vmul.f32 %v2041_v13, %v1092_v24  ;;  %v1093_v45 = vmul.f32 %v1716_v43, %v1077_v40 }
 0x274   :  { %1143 = vadd.xlane.f32.xlu1 %v1114_v38 }
 0x275   :  { %v1116_v46 = vmul.f32 %v2041_v13, %v1093_v45 }
 0x276   :  { %1145 = vadd.xlane.f32.xlu0 %v1115_v63 }
 0x278   :  { %1147 = vadd.xlane.f32.xlu1 %v1116_v46 }
 0x2c6   :  { %v1118_v1 = vpop.xlane.xlu0 %1117 }
 0x2ca   :  { %v1120_v58 = vpop.xlane.xlu0 %1119 }
 0x2cb   :  { %v1149_v59 = vpack.c.bf16 %v1120_v58, %v1118_v1 }
 0x2cd   :  { %v1171_v4 = vrot.slane %v1149_v59, %v1170_v56  ;;  %v1178_v61 = vrot.slane %v1149_v59, %v1177_v57 }
 0x2cf   :  { %1293 = vst [vmem:[#allocation9] sm:$0xf] %v1171_v4  ;;  %1294 = vst [vmem:[#allocation9 + $0x4] sm:$0xf] %v1178_v61 }
 0x2d9   :  { %v1122_v13 = vpop.xlane.xlu1 %1121 }
 0x2ed   :  { %v1124_v60 = vpop.xlane.xlu1 %1123 }
 0x2ee   :  { %v1150_v41 = vpack.c.bf16 %v1124_v60, %v1122_v13 }
 0x2ef   :  { %v1126_v6 = vpop.xlane.xlu0 %1125 }
 0x2f0   :  { %v1185_v55 = vrot.slane %v1150_v41, %v1170_v56  ;;  %v1192_v62 = vrot.slane %v1150_v41, %v1177_v57 }
 0x2f1   :  { %v1128_v51 = vpop.xlane.xlu1 %1127 }
 0x2f2   :  { %1295 = vst [vmem:[#allocation9 + $0x8] sm:$0xf] %v1185_v55  ;;  %1296 = vst [vmem:[#allocation9 + $0xc] sm:$0xf] %v1192_v62  ;;  %v1151_v20 = vpack.c.bf16 %v1128_v51, %v1126_v6 }
 0x2f3   :  { %v1130_v9 = vpop.xlane.xlu0 %1129 }
 0x2f4   :  { %v1199_v8 = vrot.slane %v1151_v20, %v1170_v56  ;;  %v1206_v7 = vrot.slane %v1151_v20, %v1177_v57 }
 0x2f5   :  { %v1132_v35 = vpop.xlane.xlu1 %1131 }
 0x2f6   :  { %1297 = vst [vmem:[#allocation9 + $0x10] sm:$0xf] %v1199_v8  ;;  %1298 = vst [vmem:[#allocation9 + $0x14] sm:$0xf] %v1206_v7  ;;  %v1152_v28 = vpack.c.bf16 %v1132_v35, %v1130_v9 }
 0x2f7   :  { %v1134_v11 = vpop.xlane.xlu0 %1133 }
 0x2f8   :  { %v1213_v47 = vrot.slane %v1152_v28, %v1170_v56  ;;  %v1220_v53 = vrot.slane %v1152_v28, %v1177_v57 }
 0x2f9   :  { %v1136_v15 = vpop.xlane.xlu1 %1135 }
 0x2fa   :  { %1299 = vst [vmem:[#allocation9 + $0x18] sm:$0xf] %v1213_v47  ;;  %1300 = vst [vmem:[#allocation9 + $0x1c] sm:$0xf] %v1220_v53  ;;  %v1153_v17 = vpack.c.bf16 %v1136_v15, %v1134_v11 }
 0x2fb   :  { %v1138_v18 = vpop.xlane.xlu0 %1137 }
 0x2fc   :  { %v1227_v36 = vrot.slane %v1153_v17, %v1170_v56  ;;  %v1234_v48 = vrot.slane %v1153_v17, %v1177_v57 }
 0x2fd   :  { %v1140_v21 = vpop.xlane.xlu1 %1139 }
 0x2fe   :  { %1301 = vst [vmem:[#allocation9 + $0x20] sm:$0xf] %v1227_v36  ;;  %1302 = vst [vmem:[#allocation9 + $0x24] sm:$0xf] %v1234_v48  ;;  %v1154_v54 = vpack.c.bf16 %v1140_v21, %v1138_v18 }
 0x2ff   :  { %v1142_v49 = vpop.xlane.xlu0 %1141 }
 0x300   :  { %v1241_v10 = vrot.slane %v1154_v54, %v1170_v56  ;;  %v1248_v22 = vrot.slane %v1154_v54, %v1177_v57 }
 0x301   :  { %v1144_v3 = vpop.xlane.xlu1 %1143 }
 0x302   :  { %1303 = vst [vmem:[#allocation9 + $0x28] sm:$0xf] %v1241_v10  ;;  %1304 = vst [vmem:[#allocation9 + $0x2c] sm:$0xf] %v1248_v22  ;;  %v1155_v23 = vpack.c.bf16 %v1144_v3, %v1142_v49 }
 0x303   :  { %v1146_v12 = vpop.xlane.xlu0 %1145 }
 0x304   :  { %v1255_v25 = vrot.slane %v1155_v23, %v1170_v56  ;;  %v1262_v27 = vrot.slane %v1155_v23, %v1177_v57 }
 0x305   :  { %v1148_v0 = vpop.xlane.xlu1 %1147 }
 0x306   :  { %1305 = vst [vmem:[#allocation9 + $0x30] sm:$0xf] %v1255_v25  ;;  %1306 = vst [vmem:[#allocation9 + $0x34] sm:$0xf] %v1262_v27  ;;  %v1156_v29 = vpack.c.bf16 %v1148_v0, %v1146_v12 }
 0x308   :  { %v1269_v30 = vrot.slane %v1156_v29, %v1170_v56  ;;  %v1276_v16 = vrot.slane %v1156_v29, %v1177_v57 }
 0x30a   :  { %1307 = vst [vmem:[#allocation9 + $0x38] sm:$0xf] %v1269_v30  ;;  %1308 = vst [vmem:[#allocation9 + $0x3c] sm:$0xf] %v1276_v16 }
 0x30b   :  { %1794 = shalt.err (!%p1791_p0)
}
 0x30c   :  { %s1795_s25 = scalar_lea.hbm %s2169_s7, 1024 }
 0x30d   :  { %p1796_p1 = scmp.ne.s32.totalorder %s2169_s7, %s1795_s25  ;;  %p1799_p2 = scmp.lt.u32.totalorder %s1795_s25, %s2169_s7 }
 0x30f   :  { %p1801_p3 = pnand %p1799_p2, %p1796_p1 }
 0x311   :  { %1804 = shalt.err (!%p1801_p3)
}
 0x312   :  { %1320 = dma.vmem_to_hbm [thread:$0]  %s1315_s22, 1024, %s2169_s7, [#allocation5], %s1813_s13, %s1813_s13, %s1814_s14  }
 0x313   :  { %1809 = dma.done.wait [#allocation5], 1024  }
 0x314   :  { %1810 = vsyncadd [#allocation5], 4294966272 }
 0x315   :  { %1324 = vsyncpa [#allocation4], 1 }
 0x316   :  { %1325 = vsyncpa [#allocation7], 1 }
 0x317   :  { %1326 = vsyncpa [#allocation5], 1 }

</bundles_post_ra>
